<compile_context>
chip_gen: v7x
topology: tpu7x:2x2x1
jax: 0.10.0
libtpu: 0.0.40
codegen_flags: <defaults>
</compile_context>

<pallas_src>
import numpy as np
import jax
import jax.numpy as jnp
from jax.experimental import pallas as pl
from jax.experimental.pallas import tpu as pltpu


def _round_up(x, m):
    return ((x + m - 1) // m) * m


def _cdiv(a, b):
    return (a + b - 1) // b


def _vmem_capacity_bytes():
    try:
        cap = getattr(pltpu.get_tpu_info(), "vmem_capacity_bytes", None)
        if cap:
            return int(cap)
    except Exception:
        pass
    return 64 * 1024 * 1024  # conservative fallback (v7x per-core VMEM)


# --------------------------------------------------------------------------------------
# Path A kernel: one whole flattened (H, W) plane per row; per-row max in-kernel.
# out_ref lanes 0..3 carry: [ sum(u_loss1), sum(un*mask), sum(b_loss), sum(mask) ]
# --------------------------------------------------------------------------------------
def _berhu_plane_kernel(inp_ref, tgt_ref, un_ref, out_ref):
    tgt = tgt_ref[...].astype(jnp.float32)
    inp = inp_ref[...].astype(jnp.float32)
    un = un_ref[...].astype(jnp.float32)

    valid = tgt > 0.0
    diff = jnp.where(valid, tgt - inp, 0.0)          # == (tgt - inp) * mask
    adiff = jnp.abs(diff)                            # == |tgt - inp| * mask

    MAX = jnp.max(adiff, axis=1, keepdims=True)      # per-(N,C) slice max, (S, 1)
    c = 0.2 * MAX
    inv = 1.0 / (2.0 * c + 1e-06)                    # per-row, not per-element
    sqdiff = (diff * diff + c * c) * inv
    # b_loss == 0 wherever mask == 0 (there adiff == 0 <= c selects adiff).
    b_loss = jnp.where(adiff <= c, adiff, sqdiff)
    u_loss1 = jnp.exp(-jnp.maximum(un, -5.0)) * b_loss   # also 0 where mask == 0

    s_u1 = jnp.sum(u_loss1)
    s_un = jnp.sum(jnp.where(valid, un, 0.0))
    s_bl = jnp.sum(b_loss)
    s_mask = jnp.sum(jnp.where(valid, 1.0, 0.0))

    lane = jax.lax.broadcasted_iota(jnp.int32, (1, 1, 128), 2)
    out_ref[...] = (jnp.where(lane == 0, s_u1, 0.0)
                    + jnp.where(lane == 1, s_un, 0.0)
                    + jnp.where(lane == 2, s_bl, 0.0)
                    + jnp.where(lane == 3, s_mask, 0.0))


# --------------------------------------------------------------------------------------
# Path B (large H*W) pass 1: per-slice max of |tgt - inp| * mask over plane chunks.
# --------------------------------------------------------------------------------------
def _berhu_chunk_max_kernel(inp_ref, tgt_ref, max_ref):
    j = pl.program_id(1)
    tgt = tgt_ref[...].astype(jnp.float32)
    inp = inp_ref[...].astype(jnp.float32)
    adiff = jnp.where(tgt > 0.0, jnp.abs(tgt - inp), 0.0)
    m = jnp.max(adiff, axis=1, keepdims=True)        # (S, 1), >= 0

    @pl.when(j == 0)
    def _():
        max_ref[...] = jnp.zeros_like(max_ref)

    max_ref[...] = jnp.maximum(max_ref[...], m)


# --------------------------------------------------------------------------------------
# Path B pass 2: loss sums per slice-block, accumulated over the chunk axis.
# --------------------------------------------------------------------------------------
def _berhu_chunk_loss_kernel(inp_ref, tgt_ref, un_ref, max_ref, out_ref):
    j = pl.program_id(1)
    tgt = tgt_ref[...].astype(jnp.float32)
    inp = inp_ref[...].astype(jnp.float32)
    un = un_ref[...].astype(jnp.float32)
    MAX = max_ref[:, 0:1]                            # (S, 1) per-slice max from pass 1

    valid = tgt > 0.0
    diff = jnp.where(valid, tgt - inp, 0.0)
    adiff = jnp.abs(diff)
    c = 0.2 * MAX
    inv = 1.0 / (2.0 * c + 1e-06)
    sqdiff = (diff * diff + c * c) * inv
    b_loss = jnp.where(adiff <= c, adiff, sqdiff)
    u_loss1 = jnp.exp(-jnp.maximum(un, -5.0)) * b_loss

    s_u1 = jnp.sum(u_loss1)
    s_un = jnp.sum(jnp.where(valid, un, 0.0))
    s_bl = jnp.sum(b_loss)
    s_mask = jnp.sum(jnp.where(valid, 1.0, 0.0))

    lane = jax.lax.broadcasted_iota(jnp.int32, (1, 1, 128), 2)
    part = (jnp.where(lane == 0, s_u1, 0.0)
            + jnp.where(lane == 1, s_un, 0.0)
            + jnp.where(lane == 2, s_bl, 0.0)
            + jnp.where(lane == 3, s_mask, 0.0))

    @pl.when(j == 0)
    def _():
        out_ref[...] = jnp.zeros_like(out_ref)

    out_ref[...] += part


def berhu_uncertainty(inputs, targets, un, *, target_block_elems=1 << 20,
                      force_chunk=None):
    """Returns (u_loss, u_loss1_masked_mean, u_loss2_masked_mean, b_loss_masked_mean)."""
    shape = inputs.shape
    H, W = shape[-2], shape[-1]
    BC = int(np.prod(shape[:-2])) if len(shape) > 2 else 1
    HW = H * W
    HW_pad = _round_up(HW, 128)

    itemsizes = [jnp.dtype(x.dtype).itemsize for x in (inputs, targets, un)]
    # Sublane multiple for the second-minor block dim: 8 (f32), 16 (bf16), 32 (int8).
    sub = max(8 * max(1, 4 // it) for it in itemsizes)

    # VMEM budget: double-buffered DMA windows for the 3 inputs plus ~4 block-sized
    # f32 temporaries (Mosaic internal scratch), capped at 75% of physical VMEM
    # (48 MiB on v7x, 96 MiB on v5e/v6e).
    vmem_budget = int(0.75 * _vmem_capacity_bytes())
    bytes_per_elem = 2 * sum(itemsizes) + 4 * 4
    budget_elems = max(sub * 128, vmem_budget // bytes_per_elem)
    block_elems = max(sub * 128, min(int(target_block_elems), budget_elems))

    def prep(x, bc_pad, hw_pad):
        x = jnp.asarray(x).reshape(BC, HW)           # native dtype; cast is in-kernel
        if bc_pad != BC or hw_pad != HW:
            # Zero padding: tgt == 0 there -> invalid -> contributes nothing.
            x = jnp.pad(x, ((0, bc_pad - BC), (0, hw_pad - HW)))
        return x

    cp_common = dict(vmem_limit_bytes=vmem_budget)

    single_pass = force_chunk is None and HW_pad * sub <= budget_elems

    if single_pass:
        # ------------- Path A: whole plane per row, single pass. ----------------------
        S = max(sub, (block_elems // HW_pad) // sub * sub)
        S = min(S, _round_up(BC, sub))
        # Guarantee >= 2 grid steps (pipelining + v7x megacore) when the slice count
        # allows it; prefer >= 4 while the block stays reasonably large (>= 64K elems).
        while S > sub and _cdiv(BC, S) < 2:
            S = max(sub, (S // 2) // sub * sub)
        while (S > sub and _cdiv(BC, S) < 4
               and ((S // 2) // sub * sub) * HW_pad >= 64 * 1024):
            S = max(sub, (S // 2) // sub * sub)
        BC_pad = _round_up(BC, S)
        num_blocks = BC_pad // S

        inp = prep(inputs, BC_pad, HW_pad)
        tgt = prep(targets, BC_pad, HW_pad)
        unr = prep(un, BC_pad, HW_pad)

        in_spec = pl.BlockSpec((S, HW_pad), lambda i: (i, 0))
        partial = pl.pallas_call(
            _berhu_plane_kernel,
            out_shape=jax.ShapeDtypeStruct((num_blocks, 1, 128), jnp.float32),
            grid_spec=pltpu.PrefetchScalarGridSpec(
                num_scalar_prefetch=0,
                grid=(num_blocks,),
                in_specs=[in_spec, in_spec, in_spec],
                out_specs=pl.BlockSpec((1, 1, 128), lambda i: (i, 0, 0)),
            ),
            compiler_params=pltpu.CompilerParams(
                dimension_semantics=("parallel",), **cp_common),
        )(inp, tgt, unr)
    else:
        # ------------- Path B: two-pass, plane-chunked (large H*W). -------------------
        S = sub
        if force_chunk is not None:
            CHUNK = max(128, _round_up(int(force_chunk), 128))
        else:
            CHUNK = max(128, (block_elems // S) // 128 * 128)
        CHUNK = min(CHUNK, HW_pad)
        HW_pad2 = _round_up(HW, CHUNK)
        num_chunks = HW_pad2 // CHUNK
        BC_pad = _round_up(BC, S)
        num_sblocks = BC_pad // S

        inp = prep(inputs, BC_pad, HW_pad2)
        tgt = prep(targets, BC_pad, HW_pad2)
        unr = prep(un, BC_pad, HW_pad2)

        chunk_spec = pl.BlockSpec((S, CHUNK), lambda i, j: (i, j))

        # Pass 1: per-(N, C)-slice max of |tgt - inp| over the (H, W) plane.
        max_arr = pl.pallas_call(
            _berhu_chunk_max_kernel,
            out_shape=jax.ShapeDtypeStruct((BC_pad, 128), jnp.float32),
            grid_spec=pltpu.PrefetchScalarGridSpec(
                num_scalar_prefetch=0,
                grid=(num_sblocks, num_chunks),
                in_specs=[chunk_spec, chunk_spec],
                out_specs=pl.BlockSpec((S, 128), lambda i, j: (i, 0)),
            ),
            compiler_params=pltpu.CompilerParams(
                dimension_semantics=("parallel", "arbitrary"), **cp_common),
        )(inp, tgt)

        # Pass 2: loss partial sums, accumulated over the chunk ("arbitrary") axis.
        partial = pl.pallas_call(
            _berhu_chunk_loss_kernel,
            out_shape=jax.ShapeDtypeStruct((num_sblocks, 1, 128), jnp.float32),
            grid_spec=pltpu.PrefetchScalarGridSpec(
                num_scalar_prefetch=0,
                grid=(num_sblocks, num_chunks),
                in_specs=[chunk_spec, chunk_spec, chunk_spec,
                          pl.BlockSpec((S, 128), lambda i, j: (i, 0))],
                out_specs=pl.BlockSpec((1, 1, 128), lambda i, j: (i, 0, 0)),
            ),
            compiler_params=pltpu.CompilerParams(
                dimension_semantics=("parallel", "arbitrary"), **cp_common),
        )(inp, tgt, unr, max_arr)

    sums = jnp.sum(partial[:, 0, :4], axis=0)
    s_u1, s_un, s_bl, s_mask = sums[0], sums[1], sums[2], sums[3]

    # NOTE: if no pixel is valid (s_mask == 0) this divides by zero, matching the
    # PyTorch reference behavior.
    u_loss = 0.5 * (s_u1 + s_un) / s_mask            # == sum((0.5*u1 + 0.5*u2)*mask)/sum(mask)
    u_loss1_mean = s_u1 / s_mask
    u_loss2_mean = s_un / s_mask                     # == un[valid_mask].mean()
    b_loss_mean = s_bl / s_mask                      # == b_loss[valid_mask].mean()
    return u_loss, u_loss1_mean, u_loss2_mean, b_loss_mean


def _reference(inputs, targets, un):
    """Pure-jnp reference mirroring the PyTorch forward, for validation."""
    inputs = jnp.asarray(inputs, jnp.float32)
    targets = jnp.asarray(targets, jnp.float32)
    un = jnp.asarray(un, jnp.float32)
    valid_mask = (targets > 0).astype(jnp.float32)
    diff = (targets - inputs) * valid_mask
    adiff = jnp.abs(targets - inputs) * valid_mask
    MAX = jnp.max(jnp.max(adiff, axis=-1, keepdims=True), axis=-2, keepdims=True)
    c = 0.2 * MAX
    sqdiff = (diff * diff + c * c) / (2 * c + 1e-06)
    b_loss = adiff * (adiff <= c) + sqdiff * (adiff > c)
    u1 = jnp.exp(-jnp.maximum(un, -5.0)) * b_loss
    u2 = un
    s_mask = jnp.sum(valid_mask)
    u_loss = jnp.sum((0.5 * u1 + 0.5 * u2) * valid_mask) / s_mask
    return (u_loss,
            jnp.sum(u1 * valid_mask) / s_mask,
            jnp.sum(u2 * valid_mask) / s_mask,
            jnp.sum(b_loss * valid_mask) / s_mask)


if __name__ == "__main__":
    B, C, H, W = 2, 4, 16, 16
    key = jax.random.PRNGKey(0)
    k1, k2, k3 = jax.random.split(key, 3)
    # targets: mix of positive (valid) and non-positive (invalid) depth values
    targets = jax.random.uniform(k1, (B, C, H, W), jnp.float32, minval=-0.5, maxval=2.0)
    inputs = jax.random.normal(k2, (B, C, H, W), jnp.float32) * 0.3 + 1.0
    un = jax.random.normal(k3, (B, C, H, W), jnp.float32) * 0.1

    refs = _reference(inputs, targets, un)

    # Path A (single pass, whole plane per row).
    outs = jax.block_until_ready(berhu_uncertainty(inputs, targets, un))
    for o, r in zip(outs, refs):
        np.testing.assert_allclose(np.asarray(o), np.asarray(r), rtol=1e-5, atol=1e-5)

    # Path B (two-pass, plane-chunked large-H*W fallback) exercised on the same small
    # inputs by forcing a 128-lane chunk.
    outs_b = jax.block_until_ready(
        berhu_uncertainty(inputs, targets, un, force_chunk=128))
    for o, r in zip(outs_b, refs):
        np.testing.assert_allclose(np.asarray(o), np.asarray(r), rtol=1e-5, atol=1e-5)

    print("KERNEL_OK")
</pallas_src>

<mosaic_0001>
module attributes {stable_mosaic.version = 11 : i64} {
  func.func @_berhu_plane_kernel(%arg0: i32, %arg1: memref<8x256xf32, #tpu.memory_space<vmem>>, %arg2: memref<8x256xf32, #tpu.memory_space<vmem>>, %arg3: memref<8x256xf32, #tpu.memory_space<vmem>>, %arg4: memref<1x1x128xf32, #tpu.memory_space<vmem>>) attributes {dimension_semantics = [#tpu.dimension_semantics<parallel>], iteration_bounds = array<i64: 1>, scalar_prefetch = 0 : i64, scratch_operands = 0 : i64, tpu.core_type = #tpu.core_type<tc>, window_params = [{transform_indices = @transform_0, window_bounds = array<i64: 8, 256>}, {transform_indices = @transform_1, window_bounds = array<i64: 8, 256>}, {transform_indices = @transform_2, window_bounds = array<i64: 8, 256>}, {transform_indices = @transform_3, window_bounds = array<i64: 1, 1, 128>}]} {
    %c0 = arith.constant 0 : index
    %c0_0 = arith.constant 0 : index
    %0 = vector.load %arg2[%c0, %c0_0] : memref<8x256xf32, #tpu.memory_space<vmem>>, vector<8x256xf32>
    %c0_1 = arith.constant 0 : index
    %c0_2 = arith.constant 0 : index
    %1 = vector.load %arg1[%c0_1, %c0_2] : memref<8x256xf32, #tpu.memory_space<vmem>>, vector<8x256xf32>
    %c0_3 = arith.constant 0 : index
    %c0_4 = arith.constant 0 : index
    %2 = vector.load %arg3[%c0_3, %c0_4] : memref<8x256xf32, #tpu.memory_space<vmem>>, vector<8x256xf32>
    %cst = arith.constant 0.000000e+00 : f32
    %3 = vector.broadcast %cst : f32 to vector<8x256xf32>
    %4 = arith.cmpf ogt, %0, %3 : vector<8x256xf32>
    %5 = arith.subf %0, %1 : vector<8x256xf32>
    %cst_5 = arith.constant 0.000000e+00 : f32
    %6 = vector.broadcast %cst_5 : f32 to vector<8x256xf32>
    %7 = arith.select %4, %5, %6 : vector<8x256xi1>, vector<8x256xf32>
    %8 = math.absf %7 : vector<8x256xf32>
    %cst_6 = arith.constant dense<0xFF800000> : vector<8xf32>
    %9 = vector.multi_reduction <maximumf>, %8, %cst_6 [1] : vector<8x256xf32> to vector<8xf32>
    %10 = vector.shape_cast %9 : vector<8xf32> to vector<8x1xf32>
    %cst_7 = arith.constant 2.000000e-01 : f32
    %11 = vector.broadcast %cst_7 : f32 to vector<8x1xf32>
    %12 = arith.mulf %11, %10 : vector<8x1xf32>
    %cst_8 = arith.constant 2.000000e+00 : f32
    %13 = vector.broadcast %cst_8 : f32 to vector<8x1xf32>
    %14 = arith.mulf %13, %12 : vector<8x1xf32>
    %cst_9 = arith.constant 9.99999997E-7 : f32
    %15 = vector.broadcast %cst_9 : f32 to vector<8x1xf32>
    %16 = arith.addf %14, %15 : vector<8x1xf32>
    %cst_10 = arith.constant 1.000000e+00 : f32
    %17 = vector.broadcast %cst_10 : f32 to vector<8x1xf32>
    %18 = arith.divf %17, %16 : vector<8x1xf32>
    %19 = arith.mulf %7, %7 : vector<8x256xf32>
    %20 = arith.mulf %12, %12 : vector<8x1xf32>
    %21 = vector.broadcast %20 : vector<8x1xf32> to vector<8x256xf32>
    %22 = arith.addf %19, %21 : vector<8x256xf32>
    %23 = vector.broadcast %18 : vector<8x1xf32> to vector<8x256xf32>
    %24 = arith.mulf %22, %23 : vector<8x256xf32>
    %25 = vector.broadcast %12 : vector<8x1xf32> to vector<8x256xf32>
    %26 = arith.cmpf ole, %8, %25 : vector<8x256xf32>
    %27 = arith.select %26, %8, %24 : vector<8x256xi1>, vector<8x256xf32>
    %cst_11 = arith.constant -5.000000e+00 : f32
    %28 = vector.broadcast %cst_11 : f32 to vector<8x256xf32>
    %29 = arith.maximumf %2, %28 : vector<8x256xf32>
    %cst_12 = arith.constant 0.000000e+00 : f32
    %30 = vector.broadcast %cst_12 : f32 to vector<8x256xf32>
    %31 = arith.subf %30, %29 : vector<8x256xf32>
    %32 = math.exp %31 : vector<8x256xf32>
    %33 = arith.mulf %32, %27 : vector<8x256xf32>
    %34 = vector.shape_cast %33 : vector<8x256xf32> to vector<1x8x256xf32>
    %cst_13 = arith.constant dense<0.000000e+00> : vector<1xf32>
    %35 = vector.multi_reduction <add>, %34, %cst_13 [1, 2] : vector<1x8x256xf32> to vector<1xf32>
    %36 = vector.shape_cast %35 : vector<1xf32> to vector<1x1x1xf32>
    %37 = vector.extract %36[0, 0, 0] : f32 from vector<1x1x1xf32>
    %cst_14 = arith.constant 0.000000e+00 : f32
    %38 = vector.broadcast %cst_14 : f32 to vector<8x256xf32>
    %39 = arith.select %4, %2, %38 : vector<8x256xi1>, vector<8x256xf32>
    %40 = vector.shape_cast %39 : vector<8x256xf32> to vector<1x8x256xf32>
    %cst_15 = arith.constant dense<0.000000e+00> : vector<1xf32>
    %41 = vector.multi_reduction <add>, %40, %cst_15 [1, 2] : vector<1x8x256xf32> to vector<1xf32>
    %42 = vector.shape_cast %41 : vector<1xf32> to vector<1x1x1xf32>
    %43 = vector.extract %42[0, 0, 0] : f32 from vector<1x1x1xf32>
    %44 = vector.shape_cast %27 : vector<8x256xf32> to vector<1x8x256xf32>
    %cst_16 = arith.constant dense<0.000000e+00> : vector<1xf32>
    %45 = vector.multi_reduction <add>, %44, %cst_16 [1, 2] : vector<1x8x256xf32> to vector<1xf32>
    %46 = vector.shape_cast %45 : vector<1xf32> to vector<1x1x1xf32>
    %47 = vector.extract %46[0, 0, 0] : f32 from vector<1x1x1xf32>
    %cst_17 = arith.constant 1.000000e+00 : f32
    %cst_18 = arith.constant 0.000000e+00 : f32
    %48 = vector.broadcast %cst_17 : f32 to vector<8x256xf32>
    %49 = vector.broadcast %cst_18 : f32 to vector<8x256xf32>
    %50 = arith.select %4, %48, %49 : vector<8x256xi1>, vector<8x256xf32>
    %51 = vector.shape_cast %50 : vector<8x256xf32> to vector<1x8x256xf32>
    %cst_19 = arith.constant dense<0.000000e+00> : vector<1xf32>
    %52 = vector.multi_reduction <add>, %51, %cst_19 [1, 2] : vector<1x8x256xf32> to vector<1xf32>
    %53 = vector.shape_cast %52 : vector<1xf32> to vector<1x1x1xf32>
    %54 = vector.extract %53[0, 0, 0] : f32 from vector<1x1x1xf32>
    %55 = tpu.iota {dimensions = array<i32: 2>} : vector<1x1x128xi32>
    %c0_i32 = arith.constant 0 : i32
    %56 = vector.broadcast %c0_i32 : i32 to vector<1x1x128xi32>
    %57 = arith.cmpi eq, %55, %56 : vector<1x1x128xi32>
    %cst_20 = arith.constant 0.000000e+00 : f32
    %58 = vector.broadcast %37 : f32 to vector<1x1x128xf32>
    %59 = vector.broadcast %cst_20 : f32 to vector<1x1x128xf32>
    %60 = arith.select %57, %58, %59 : vector<1x1x128xi1>, vector<1x1x128xf32>
    %c1_i32 = arith.constant 1 : i32
    %61 = vector.broadcast %c1_i32 : i32 to vector<1x1x128xi32>
    %62 = arith.cmpi eq, %55, %61 : vector<1x1x128xi32>
    %cst_21 = arith.constant 0.000000e+00 : f32
    %63 = vector.broadcast %43 : f32 to vector<1x1x128xf32>
    %64 = vector.broadcast %cst_21 : f32 to vector<1x1x128xf32>
    %65 = arith.select %62, %63, %64 : vector<1x1x128xi1>, vector<1x1x128xf32>
    %66 = arith.addf %60, %65 : vector<1x1x128xf32>
    %c2_i32 = arith.constant 2 : i32
    %67 = vector.broadcast %c2_i32 : i32 to vector<1x1x128xi32>
    %68 = arith.cmpi eq, %55, %67 : vector<1x1x128xi32>
    %cst_22 = arith.constant 0.000000e+00 : f32
    %69 = vector.broadcast %47 : f32 to vector<1x1x128xf32>
    %70 = vector.broadcast %cst_22 : f32 to vector<1x1x128xf32>
    %71 = arith.select %68, %69, %70 : vector<1x1x128xi1>, vector<1x1x128xf32>
    %72 = arith.addf %66, %71 : vector<1x1x128xf32>
    %c3_i32 = arith.constant 3 : i32
    %73 = vector.broadcast %c3_i32 : i32 to vector<1x1x128xi32>
    %74 = arith.cmpi eq, %55, %73 : vector<1x1x128xi32>
    %cst_23 = arith.constant 0.000000e+00 : f32
    %75 = vector.broadcast %54 : f32 to vector<1x1x128xf32>
    %76 = vector.broadcast %cst_23 : f32 to vector<1x1x128xf32>
    %77 = arith.select %74, %75, %76 : vector<1x1x128xi1>, vector<1x1x128xf32>
    %78 = arith.addf %72, %77 : vector<1x1x128xf32>
    %c0_24 = arith.constant 0 : index
    %c0_25 = arith.constant 0 : index
    %c0_26 = arith.constant 0 : index
    %79 = vector.load %arg4[%c0_24, %c0_25, %c0_26] : memref<1x1x128xf32, #tpu.memory_space<vmem>>, vector<1x1x128xf32>
    tpu.vector_store %arg4[%c0_24, %c0_25, %c0_26], %78 {strides = array<i32>} : memref<1x1x128xf32, #tpu.memory_space<vmem>>, vector<1x1x128xf32>,
    return
  }
  func.func @transform_0(%arg0: i32) -> (i32, i32) {
    %c0_i32 = arith.constant 0 : i32
    %c0_i32_0 = arith.constant 0 : i32
    return %arg0, %c0_i32 : i32, i32
  }
  func.func @transform_1(%arg0: i32) -> (i32, i32) {
    %c0_i32 = arith.constant 0 : i32
    %c0_i32_0 = arith.constant 0 : i32
    return %arg0, %c0_i32 : i32, i32
  }
  func.func @transform_2(%arg0: i32) -> (i32, i32) {
    %c0_i32 = arith.constant 0 : i32
    %c0_i32_0 = arith.constant 0 : i32
    return %arg0, %c0_i32 : i32, i32
  }
  func.func @transform_3(%arg0: i32) -> (i32, i32, i32) {
    %c0_i32 = arith.constant 0 : i32
    %c0_i32_0 = arith.constant 0 : i32
    %c0_i32_1 = arith.constant 0 : i32
    return %arg0, %c0_i32, %c0_i32_0 : i32, i32, i32
  }
}

</mosaic_0001>

<bundles_post_ra>
// kernel: tpu_custom_call.1
= control target key start
LH: loop header
LB: loop body
LE: loop exit
PB: predicated region body
PF: predicated region fallthrough
CT: control target
= control target key end

     0   :  { %8 = vsyncpa [#allocation3], 0  ;;  %s363_s0 = inlined_call_operand.hbm [shape: f32[8,256], index: 0, kind: input, shape index: {}]   ;;  %s364_s1 = inlined_call_operand.hbm [shape: f32[8,256], index: 1, kind: input, shape index: {}]   ;;  %s365_s2 = inlined_call_operand.hbm [shape: f32[8,256], index: 2, kind: input, shape index: {}]   ;;  %s366_s3 = inlined_call_operand.hbm [shape: f32[1,1,128], index: 3, kind: output, shape index: {}]  }
   0x1   :  { %9 = vsyncpa [#allocation6], 0 }
   0x2   :  { %10 = vsyncpa [#allocation4], 0  ;;  %s284_s12 = smov [#allocation5]   ;;  %s285_s14 = smov [#allocation2]  }
   0x3   :  { %s27_s13 = sshll.u32 %s284_s12, 4  ;;  %s17_s15 = sshll.u32 %s285_s14, 4  ;;  %s28_s13 = int_to_ptr.vmem [resolvable:$true] %s27_s13  ;;  %s18_s15 = int_to_ptr.vmem [resolvable:$true] %s17_s15 }
   0x4   :  { %s190_s18 = scalar_lea.hbm %s364_s1, 256 }
   0x5   :  { %p191_p0 = scmp.ne.s32.totalorder %s364_s1, %s190_s18  ;;  %p194_p1 = scmp.lt.u32.totalorder %s190_s18, %s364_s1 }
   0x7   :  { %p196_p2 = pnand %p194_p1, %p191_p0 }
   0x9   :  { %199 = shalt.err (!%p196_p2)
}
   0xa   :  { %s200_s23 = scalar_lea.vmem %s28_s13, 256  ;;  %p205_p4 = scmp.lt.s32.totalorder %s28_s13, %s28_s13 }
   0xb   :  { %p201_p3 = scmp.ne.s32.totalorder %s28_s13, %s200_s23  ;;  %p206_p5 = scmp.lt.s32.totalorder %s200_s23, %s200_s23 }
   0xd   :  { %p207_p6 = por %p206_p5, %p205_p4 }
   0xf   :  { %p208_p7 = pnand %p207_p6, %p201_p3 }
  0x11   :  { %211 = shalt.err (!%p208_p7)
}
  0x12   :  { %30 = dma.hbm_to_vmem [thread:$0]  %s364_s1, 256, %s28_s13, [#allocation6]  }
  0x13   :  { %s212_s28 = scalar_lea.hbm %s363_s0, 256 }
  0x14   :  { %p213_p8 = scmp.ne.s32.totalorder %s363_s0, %s212_s28  ;;  %p216_p9 = scmp.lt.u32.totalorder %s212_s28, %s363_s0 }
  0x16   :  { %p218_p10 = pnand %p216_p9, %p213_p8 }
  0x18   :  { %221 = shalt.err (!%p218_p10)
}
  0x19   :  { %s222_s6 = scalar_lea.vmem %s18_s15, 256  ;;  %p227_p12 = scmp.lt.s32.totalorder %s18_s15, %s18_s15 }
  0x1a   :  { %p223_p11 = scmp.ne.s32.totalorder %s18_s15, %s222_s6  ;;  %p228_p13 = scmp.lt.s32.totalorder %s222_s6, %s222_s6 }
  0x1c   :  { %p229_p0 = por %p228_p13, %p227_p12 }
  0x1e   :  { %p230_p1 = pnand %p229_p0, %p223_p11 }
  0x20   :  { %233 = shalt.err (!%p230_p1)
}
  0x21   :  { %20 = dma.hbm_to_vmem [thread:$0]  %s363_s0, 256, %s18_s15, [#allocation3]  }
  0x22   :  { %s286_s8 = smov [#allocation7]   ;;  %s234_s12 = scalar_lea.hbm %s365_s2, 256 }
  0x23   :  { %s37_s9 = sshll.u32 %s286_s8, 4  ;;  %p235_p2 = scmp.ne.s32.totalorder %s365_s2, %s234_s12  ;;  %s38_s9 = int_to_ptr.vmem [resolvable:$true] %s37_s9 }
  0x24   :  { %p238_p3 = scmp.lt.u32.totalorder %s234_s12, %s365_s2 }
  0x26   :  { %p240_p4 = pnand %p238_p3, %p235_p2 }
  0x28   :  { %243 = shalt.err (!%p240_p4)
}
  0x29   :  { %s244_s18 = scalar_lea.vmem %s38_s9, 256  ;;  %p249_p6 = scmp.lt.s32.totalorder %s38_s9, %s38_s9 }
  0x2a   :  { %p245_p5 = scmp.ne.s32.totalorder %s38_s9, %s244_s18  ;;  %p250_p7 = scmp.lt.s32.totalorder %s244_s18, %s244_s18 }
  0x2c   :  { %p251_p8 = por %p250_p7, %p249_p6 }
  0x2e   :  { %p252_p9 = pnand %p251_p8, %p245_p5 }
  0x30   :  { %255 = shalt.err (!%p252_p9)
}
  0x31   :  { %40 = dma.hbm_to_vmem [thread:$0]  %s365_s2, 256, %s38_s9, [#allocation6]  }
  0x32   :  { %278 = dma.done.wait [#allocation3], 256  }
  0x33   :  { %279 = vsyncadd [#allocation3], 4294967040 }
  0x34   :  { %280 = dma.done.wait [#allocation6], 512  }
  0x35   :  { %281 = vsyncadd [#allocation6], 4294966784  ;;  %v50_v0 = vld [vmem:[#allocation5] sm:$0xff]  ;;  %v51_v1 = vld [vmem:[#allocation5 + $0x8] sm:$0xff]  ;;  %v287_v16 = vmov 0.0   ;;  %s288_s22 = smov [#allocation8]  }
  0x36   :  { %v52_v2 = vld [vmem:[#allocation2] sm:$0xff]  ;;  %v53_v3 = vld [vmem:[#allocation2 + $0x8] sm:$0xff]  ;;  %vm56_vm0 = vcmp.gt.f32.partialorder %v50_v0, 0.0  ;;  %vm57_vm1 = vcmp.gt.f32.partialorder %v51_v1, 0.0  ;;  %s161_s23 = sshll.u32 %s288_s22, 4  ;;  %s162_s23 = int_to_ptr.vmem [resolvable:$true] %s161_s23 }
  0x37   :  { %v58_v4 = vsub.f32 %v50_v0, %v52_v2  ;;  %v59_v5 = vsub.f32 %v51_v1, %v53_v3  ;;  %v54_v11 = vld [vmem:[#allocation7] sm:$0xff]  ;;  %v55_v12 = vld [vmem:[#allocation7 + $0x8] sm:$0xff]  ;;  %v125_v17 = vsel %vm56_vm0, 1.0, %v287_v16  ;;  %v126_v18 = vsel %vm57_vm1, 1.0, %v287_v16  ;;  %s256_s24 = scalar_lea.vmem %s162_s23, 16  ;;  %s260_s25 = scalar_lea.vmem %s162_s23, 32 }
  0x38   :  { %v103_v13 = vsel %vm56_vm0, %v54_v11, 0.0  ;;  %v104_v14 = vsel %vm57_vm1, %v55_v12, 0.0  ;;  %v127_v19 = vadd.f32 %v126_v18, %v125_v17  ;;  %v83_v20 = vmax.f32 %v54_v11, -5.0  ;;  %p257_p10 = scmp.ne.s32.totalorder %s162_s23, %s256_s24  ;;  %p261_p11 = scmp.lt.s32.totalorder %s162_s23, %s162_s23 }
  0x39   :  { %v60_v6 = vsel %vm56_vm0, %v58_v4, 0.0  ;;  %v61_v7 = vsel %vm57_vm1, %v59_v5, 0.0  ;;  %v105_v15 = vadd.f32 %v104_v14, %v103_v13  ;;  %v84_v21 = vmax.f32 %v55_v12, -5.0  ;;  %p262_p12 = scmp.lt.s32.totalorder %s260_s25, %s256_s24 }
  0x3a   :  { %v62_v8 = vand.u32 2147483647, %v60_v6  ;;  %v63_v9 = vand.u32 2147483647, %v61_v7  ;;  %v85_v22 = vsub.f32 0.0, %v83_v20  ;;  %v72_v30 = vmul.f32 %v60_v6, %v60_v6 }
  0x3b   :  { %106 = vadd.xlane.f32.xlu1 %v105_v15  ;;  %v86_v24 = vsub.f32 0.0, %v84_v21  ;;  %v73_v31 = vmul.f32 %v61_v7, %v61_v7  ;;  %p263_p13 = por %p262_p12, %p261_p11 }
  0x3c   :  { %v64_v10 = vmax.f32 %v62_v8, %v63_v9  ;;  %v87_v26 = vmul.f32 1.442695, %v85_v22 }
  0x3d   :  { %v89_v28 = vmul.f32 1.442695, %v86_v24  ;;  %p264_p0 = pnand %p263_p13, %p257_p10 }
  0x3e   :  { %65 = vmax.xlane.f32.xlu0 %v64_v10  ;;  %184 = vpow2.f32 %v87_v26  ;;  %v137_v10 = vlaneseq }
  0x40   :  { %v138_v11 = vand.u32 127, %v137_v10 }
  0x42   :  { %vm139_vm4 = vcmp.eq.s32.totalorder %v138_v11, 0  ;;  %vm142_vm5 = vcmp.eq.s32.totalorder %v138_v11, 1  ;;  %vm146_vm6 = vcmp.eq.s32.totalorder %v138_v11, 2  ;;  %vm150_vm7 = vcmp.eq.s32.totalorder %v138_v11, 3 }
  0x48   :  { %v185_v33 = vpop.eup %184 }
  0xc8   :  { %v107_v46 = vpop.xlane.xlu1 %106 }
  0xc9   :  { %v108_v47 = vrot.slane %v107_v46, 4 }
  0xcb   :  { %v66_v23 = vpop.xlane.xlu0 %65  ;;  %v109_v48 = vadd.f32 %v108_v47, %v107_v46 }
  0xcc   :  { %v67_v25 = vmul.f32 0.2, %v66_v23 }
  0xcd   :  { %v110_v51 = vrot.slane %v109_v48, 2 }
  0xce   :  { %v68_v27 = vmul.f32 2.0, %v67_v25  ;;  %v74_v32 = vmul.f32 %v67_v25, %v67_v25  ;;  %vm79_vm2 = vcmp.le.f32.partialorder %v62_v8, %v67_v25  ;;  %vm80_vm3 = vcmp.le.f32.partialorder %v63_v9, %v67_v25 }
  0xcf   :  { %v111_v58 = vadd.f32 %v110_v51, %v109_v48 }
  0xd0   :  { %v69_v29 = vadd.f32 1e-06, %v68_v27  ;;  %v75_v34 = vadd.f32 %v74_v32, %v72_v30  ;;  %v76_v35 = vadd.f32 %v74_v32, %v73_v31 }
  0xd1   :  { %v112_v0 = vrot.slane %v111_v58, 1 }
  0xd2   :  { %186 = vrcp.f32 %v69_v29 }
  0xd3   :  { %188 = vpow2.f32 %v89_v28  ;;  %v113_v6 = vadd.f32 %v112_v0, %v111_v58 }
  0xdc   :  { %v187_v36 = vpop.eup %186 }
  0xdd   :  { %v189_v37 = vpop.eup %188  ;;  %v77_v38 = vmul.f32 %v187_v36, %v75_v34  ;;  %v78_v39 = vmul.f32 %v187_v36, %v76_v35 }
  0xdf   :  { %v81_v40 = vsel %vm79_vm2, %v62_v8, %v77_v38  ;;  %v82_v41 = vsel %vm80_vm3, %v63_v9, %v78_v39 }
  0xe0   :  { %v115_v42 = vadd.f32 %v82_v41, %v81_v40  ;;  %v91_v43 = vmul.f32 %v185_v33, %v81_v40  ;;  %v92_v44 = vmul.f32 %v189_v37, %v82_v41 }
  0xe2   :  { %116 = vadd.xlane.f32.xlu1 %v115_v42  ;;  %v93_v45 = vadd.f32 %v92_v44, %v91_v43 }
  0xe4   :  { %94 = vadd.xlane.f32.xlu0 %v93_v45 }
  0xe8   :  { %128 = vadd.xlane.f32.xlu0 %v127_v19 }
 0x16f   :  { %v117_v49 = vpop.xlane.xlu1 %116 }
 0x170   :  { %v118_v50 = vrot.slane %v117_v49, 4 }
 0x171   :  { %v95_v52 = vpop.xlane.xlu0 %94 }
 0x172   :  { %v119_v53 = vadd.f32 %v118_v50, %v117_v49  ;;  %v96_v54 = vrot.slane %v95_v52, 4 }
 0x174   :  { %v120_v55 = vrot.slane %v119_v53, 2  ;;  %v97_v56 = vadd.f32 %v96_v54, %v95_v52 }
 0x175   :  { %v129_v57 = vpop.xlane.xlu0 %128 }
 0x176   :  { %v121_v59 = vadd.f32 %v120_v55, %v119_v53  ;;  %v98_v60 = vrot.slane %v97_v56, 2  ;;  %v130_v61 = vrot.slane %v129_v57, 4 }
 0x178   :  { %v131_v62 = vadd.f32 %v130_v61, %v129_v57  ;;  %v99_v63 = vadd.f32 %v98_v60, %v97_v56  ;;  %v122_v3 = vrot.slane %v121_v59, 1 }
 0x17a   :  { %v132_v1 = vrot.slane %v131_v62, 2  ;;  %v100_v2 = vrot.slane %v99_v63, 1  ;;  %v123_v7 = vadd.f32 %v122_v3, %v121_v59 }
 0x17c   :  { %v133_v4 = vadd.f32 %v132_v1, %v131_v62  ;;  %v101_v5 = vadd.f32 %v100_v2, %v99_v63 }
 0x17e   :  { %171 = vpush %v101_v5  ;;  %v134_v8 = vrot.slane %v133_v4, 1 }
 0x17f   :  { %173 = vpush %v113_v6 }
 0x180   :  { %175 = vpush %v123_v7  ;;  %v135_v9 = vadd.f32 %v134_v8, %v133_v4 }
 0x182   :  { %177 = vpush %v135_v9 }
 0x1af   :  { %s172_s2 = spop %171 }
 0x1b0   :  { %v140_v12 = vstv %s172_s2  ;;  %s174_s19 = spop %173 }
 0x1b1   :  { %v141_v13 = vsel %vm139_vm4, %v140_v12, 0.0  ;;  %v143_v14 = vstv %s174_s19  ;;  %s176_s20 = spop %175 }
 0x1b2   :  { %v144_v15 = vsel %vm142_vm5, %v143_v14, 0.0  ;;  %v147_v16 = vstv %s176_s20 }
 0x1b3   :  { %v145_v17 = vadd.f32 %v144_v15, %v141_v13  ;;  %s178_s21 = spop %177  ;;  %v148_v18 = vsel %vm146_vm6, %v147_v16, 0.0 }
 0x1b4   :  { %v151_v19 = vstv %s178_s21 }
 0x1b5   :  { %v149_v20 = vadd.f32 %v148_v18, %v145_v17  ;;  %v152_v21 = vsel %vm150_vm7, %v151_v19, 0.0 }
 0x1b7   :  { %v153_v22 = vadd.f32 %v152_v21, %v149_v20 }
 0x1b9   :  { %154 = vst [vmem:[#allocation8] sm:$0x1] %v153_v22 }
 0x1ba   :  { %267 = shalt.err (!%p264_p0)
}
 0x1bb   :  { %s268_s28 = scalar_lea.hbm %s366_s3, 16 }
 0x1bc   :  { %p269_p1 = scmp.ne.s32.totalorder %s366_s3, %s268_s28  ;;  %p272_p2 = scmp.lt.u32.totalorder %s268_s28, %s366_s3 }
 0x1be   :  { %p274_p3 = pnand %p272_p2, %p269_p1 }
 0x1c0   :  { %277 = shalt.err (!%p274_p3)
}
 0x1c1   :  { %164 = dma.vmem_to_hbm [thread:$0]  %s162_s23, 16, %s366_s3, [#allocation4]  }
 0x1c2   :  { %282 = dma.done.wait [#allocation4], 16  }
 0x1c3   :  { %283 = vsyncadd [#allocation4], 4294967280 }
 0x1c4   :  { %168 = vsyncpa [#allocation3], 1 }
 0x1c5   :  { %169 = vsyncpa [#allocation6], 1 }
 0x1c6   :  { %170 = vsyncpa [#allocation4], 1 }

</bundles_post_ra>
